<compile_context>
chip_gen: v5e
topology: v5e:2x2
jax: 0.10.0
libtpu: 0.0.40
codegen_flags: <defaults>
</compile_context>

<pallas_src>
import functools
import math

import jax
import jax.numpy as jnp
from jax.experimental import pallas as pl
from jax.experimental.pallas import tpu as pltpu


# ---------------------------------------------------------------------------
# Kernel 1: tiled projection  y = x @ W.T   (W kept in PyTorch (out, in) layout)
# ---------------------------------------------------------------------------
def _matmul_kernel(x_ref, w_ref, o_ref, acc_ref):
    # x_ref: (tm, tk) f32/bf16, w_ref: (tn, tk) f32, acc: (tm, tn) f32
    @pl.when(pl.program_id(2) == 0)
    def _():
        acc_ref[...] = jnp.zeros_like(acc_ref)

    # In-kernel bf16 cast (no wrapper-side cast round-trip through HBM);
    # contract K with K -> no explicit transpose of the PyTorch-layout weight.
    acc_ref[...] += jax.lax.dot_general(
        x_ref[...].astype(jnp.bfloat16),
        w_ref[...].astype(jnp.bfloat16),
        dimension_numbers=(((1,), (1,)), ((), ())),
        preferred_element_type=jnp.float32,
    )

    # Store/cast the output tile only once, on the final reduction step.
    @pl.when(pl.program_id(2) == pl.num_programs(2) - 1)
    def _():
        o_ref[...] = acc_ref[...].astype(o_ref.dtype)


def _plan_tile(dim, candidates=(512, 256, 128)):
    """Return (padded_dim, tile).

    Prefer regular 128-multiple tiles (up to 512); keep small irregular dims as
    a single full-extent block; pad large irregular dims up to a multiple of
    128 so the pipeline keeps clean MXU-shaped tiles."""
    for t in candidates:
        if dim % t == 0:
            return dim, t
    if dim <= 512:
        return dim, dim
    padded = ((dim + 127) // 128) * 128
    for t in candidates:
        if padded % t == 0:
            return padded, t
    return padded, 128


def linear(x2d, w, out_dtype=jnp.float32):
    """x2d: (M, K), w: (N, K) PyTorch-style weight. Returns (M, N) = x2d @ w.T."""
    M, K = x2d.shape
    N, K2 = w.shape
    assert K == K2, (K, K2)

    Mp, tm = _plan_tile(M)
    Np, tn = _plan_tile(N)
    Kp, tk = _plan_tile(K)

    if (Mp, Kp) != (M, K):
        x2d = jnp.pad(x2d, ((0, Mp - M), (0, Kp - K)))
    if (Np, Kp) != (N, K):
        w = jnp.pad(w, ((0, Np - N), (0, Kp - K)))

    grid = (Mp // tm, Np // tn, Kp // tk)

    out = pl.pallas_call(
        _matmul_kernel,
        out_shape=jax.ShapeDtypeStruct((Mp, Np), out_dtype),
        grid_spec=pltpu.PrefetchScalarGridSpec(
            num_scalar_prefetch=0,
            grid=grid,
            in_specs=[
                pl.BlockSpec((tm, tk), lambda i, j, k: (i, k)),
                pl.BlockSpec((tn, tk), lambda i, j, k: (j, k)),
            ],
            out_specs=pl.BlockSpec((tm, tn), lambda i, j, k: (i, j)),
            scratch_shapes=[pltpu.VMEM((tm, tn), jnp.float32)],
        ),
        compiler_params=pltpu.CompilerParams(
            dimension_semantics=("parallel", "parallel", "arbitrary"),
            vmem_limit_bytes=32 * 1024 * 1024,  # tiles fit easily on all gens
        ),
    )(x2d, w)

    if (Mp, Np) != (M, N):
        out = out[:M, :N]
    return out


# ---------------------------------------------------------------------------
# Kernel 2: multi-head scaled dot-product attention with d2l masked softmax.
# Grid = (batch, query-tile). Heads are processed inside the kernel with static
# lane slices; per-head results are written into a (tq, D) f32 VMEM scratch and
# stored once, lane-dense, as (tq, num_heads*head_dim).
# ---------------------------------------------------------------------------
def _attention_kernel(vlen_ref, q_ref, k_ref, v_ref, o_ref, acc_ref,
                      *, num_heads, head_dim):
    b = pl.program_id(0)
    vlen = vlen_ref[b]                         # scalar int32 from SMEM

    q = q_ref[0]                               # (tq, D)  bf16
    k = k_ref[0]                               # (Skv, D) bf16
    v = v_ref[0]                               # (Skv, D) bf16
    tq = q.shape[0]
    skv = k.shape[0]

    # Hoisted per-grid-step VPU work: pre-scale q once, build additive bias once.
    q = q * (1.0 / math.sqrt(head_dim))
    kv_idx = jax.lax.broadcasted_iota(jnp.int32, (tq, skv), 1)
    bias = jnp.where(kv_idx < vlen, jnp.float32(0.0), jnp.float32(-1e6))

    for h in range(num_heads):                 # static unroll; heads in lane axis
        lo = h * head_dim
        hi = lo + head_dim

        # scores = (Q_h / sqrt(d)) K_h^T   -- contract last dims, f32 accumulate.
        s = jax.lax.dot_general(
            q[:, lo:hi], k[:, lo:hi],
            dimension_numbers=(((1,), (1,)), ((), ())),
            preferred_element_type=jnp.float32,
        )
        s = s + bias                           # d2l masked_softmax: -1e6 fill
        s = s - jnp.max(s, axis=-1, keepdims=True)
        p = jnp.exp(s)
        p = p * pl.reciprocal(jnp.sum(p, axis=-1, keepdims=True), approx=True)

        # TODO(synk): dropout(p) skipped (eval-mode identity).
        acc_ref[:, lo:hi] = jnp.dot(
            p.astype(v.dtype), v[:, lo:hi], preferred_element_type=jnp.float32
        )

    # Single lane-dense store of all heads concatenated -> (tq, D).
    o_ref[0] = acc_ref[...].astype(o_ref.dtype)


def dot_product_attention(q, k, v, valid_lens, num_heads, *, num_hiddens,
                          fused_qkv=False):
    """q: (B, Sq, D) (or (B, S, 3D) if fused_qkv, passed also as k and v),
    k/v: (B, Skv, D) bf16; valid_lens: (B,) int32.
    Returns (B, Sq, D) bf16 with heads already concatenated along last dim."""
    B, Sq = q.shape[0], q.shape[1]
    Skv = k.shape[1]
    D = num_hiddens
    head_dim = D // num_heads

    # Query-tile axis keeps the per-step VMEM footprint bounded and gives the
    # grid a second parallel axis (megacore-friendly on v7x).
    tq = Sq
    for t in (512, 256, 128):
        if Sq % t == 0:
            tq = t
            break
    n_q_tiles = Sq // tq

    if fused_qkv:
        # Same (B, S, 3D) array passed three times; index_maps pick lane-block
        # 0/1/2 so no XLA lane-slice copies are materialized.
        q_spec = pl.BlockSpec((1, tq, D), lambda b, qi, vl: (b, qi, 0))
        k_spec = pl.BlockSpec((1, Skv, D), lambda b, qi, vl: (b, 0, 1))
        v_spec = pl.BlockSpec((1, Skv, D), lambda b, qi, vl: (b, 0, 2))
    else:
        q_spec = pl.BlockSpec((1, tq, D), lambda b, qi, vl: (b, qi, 0))
        k_spec = pl.BlockSpec((1, Skv, D), lambda b, qi, vl: (b, 0, 0))
        v_spec = pl.BlockSpec((1, Skv, D), lambda b, qi, vl: (b, 0, 0))

    # Scoped-VMEM budget: double-buffered bf16 Q/K/V/O blocks + f32 scratch +
    # per-head f32 scores. Clamp to <=64 MiB so v7x (64 MiB physical) keeps
    # headroom while v5e/v6e (128 MiB) can exceed the 32 MiB default.
    blk_bytes = 2 * 2 * (tq * D + 2 * Skv * D + tq * D)      # double-buffered bf16
    blk_bytes += tq * D * 4 + 2 * tq * Skv * 4               # scratch + scores
    vmem_limit = int(min(64 * 1024 * 1024,
                         max(32 * 1024 * 1024, 2 * blk_bytes)))

    kernel = functools.partial(
        _attention_kernel, num_heads=num_heads, head_dim=head_dim
    )
    return pl.pallas_call(
        kernel,
        out_shape=jax.ShapeDtypeStruct((B, Sq, D), jnp.bfloat16),
        grid_spec=pltpu.PrefetchScalarGridSpec(
            num_scalar_prefetch=1,
            grid=(B, n_q_tiles),
            in_specs=[q_spec, k_spec, v_spec],
            out_specs=pl.BlockSpec((1, tq, D), lambda b, qi, vl: (b, qi, 0)),
            scratch_shapes=[pltpu.VMEM((tq, D), jnp.float32)],
        ),
        compiler_params=pltpu.CompilerParams(
            dimension_semantics=("parallel", "parallel"),
            vmem_limit_bytes=vmem_limit,
        ),
    )(valid_lens, q, k, v)


# ---------------------------------------------------------------------------
# Module forward
# ---------------------------------------------------------------------------
def prepare_params(params):
    """One-time param setup: precompute the fused QKV weight (out of the hot path)."""
    p = dict(params)
    if "W_qkv" not in p:
        p["W_qkv"] = jnp.concatenate([p["W_q"], p["W_k"], p["W_v"]], axis=0)
    return p


def multihead_attention(params, queries, keys, values, valid_lens, num_heads):
    B, Sq, _ = queries.shape
    Skv = keys.shape[1]
    D = params["W_q"].shape[0]  # num_hiddens

    if valid_lens is None:
        vlens = jnp.full((B,), Skv, dtype=jnp.int32)
    else:
        vlens = valid_lens.astype(jnp.int32)   # (B,) -- no per-head repeat needed

    if (queries is keys) and (keys is values) and ("W_qkv" in params):
        # Self-attention fast path: fused QKV projection, one HBM read of x,
        # and lane-block BlockSpecs instead of slicing qkv in XLA.
        qkv = linear(queries.reshape(B * Sq, queries.shape[2]), params["W_qkv"],
                     out_dtype=jnp.bfloat16).reshape(B, Sq, 3 * D)
        out = dot_product_attention(qkv, qkv, qkv, vlens, num_heads,
                                    num_hiddens=D, fused_qkv=True)
    else:
        q = linear(queries.reshape(B * Sq, queries.shape[2]), params["W_q"],
                   out_dtype=jnp.bfloat16).reshape(B, Sq, D)
        k = linear(keys.reshape(B * Skv, keys.shape[2]), params["W_k"],
                   out_dtype=jnp.bfloat16).reshape(B, Skv, D)
        v = linear(values.reshape(B * Skv, values.shape[2]), params["W_v"],
                   out_dtype=jnp.bfloat16).reshape(B, Skv, D)
        out = dot_product_attention(q, k, v, vlens, num_heads,
                                    num_hiddens=D, fused_qkv=False)

    o = linear(out.reshape(B * Sq, D), params["W_o"],
               out_dtype=jnp.float32).reshape(B, Sq, D)
    return o


# ---------------------------------------------------------------------------
# Pure-JAX reference (f32) for a loose sanity check.
# ---------------------------------------------------------------------------
def _ref_forward(params, X, valid_lens, num_heads):
    B, S, _ = X.shape
    D = params["W_q"].shape[0]
    hd = D // num_heads
    q = X @ params["W_q"].T
    k = X @ params["W_k"].T
    v = X @ params["W_v"].T

    def split(t):
        return t.reshape(B, S, num_heads, hd).transpose(0, 2, 1, 3)

    qh, kh, vh = split(q), split(k), split(v)
    scores = jnp.einsum("bhqd,bhkd->bhqk", qh, kh) / math.sqrt(hd)
    mask = jnp.arange(S)[None, None, None, :] < valid_lens[:, None, None, None]
    scores = jnp.where(mask, scores, -1e6)
    p = jax.nn.softmax(scores, axis=-1)
    out = jnp.einsum("bhqk,bhkd->bhqd", p, vh)
    out = out.transpose(0, 2, 1, 3).reshape(B, S, D)
    return out @ params["W_o"].T


if __name__ == "__main__":
    # Small, forward-consistent shapes (self-attention, exercising the fused path).
    B, S = 2, 8
    num_hiddens, num_heads = 32, 4

    key = jax.random.PRNGKey(0)
    kx, kwq, kwk, kwv, kwo = jax.random.split(key, 5)

    X = jax.random.normal(kx, (B, S, num_hiddens), dtype=jnp.float32)
    valid_lens = jnp.array([3, 6], dtype=jnp.int32)  # per-batch valid key lengths

    scale = 1.0 / math.sqrt(num_hiddens)
    params = {
        "W_q": scale * jax.random.normal(kwq, (num_hiddens, num_hiddens), jnp.float32),
        "W_k": scale * jax.random.normal(kwk, (num_hiddens, num_hiddens), jnp.float32),
        "W_v": scale * jax.random.normal(kwv, (num_hiddens, num_hiddens), jnp.float32),
        "W_o": scale * jax.random.normal(kwo, (num_hiddens, num_hiddens), jnp.float32),
    }
    params = prepare_params(params)  # builds W_qkv once, outside the hot path

    out = multihead_attention(params, X, X, X, valid_lens, num_heads)
    out = jax.block_until_ready(out)
    assert out.shape == (B, S, num_hiddens)
    assert jnp.all(jnp.isfinite(out))

    # Loose tolerance: activations/matmuls run in bf16 with f32 accumulation,
    # and the softmax denominator uses the EUP approximate reciprocal.
    ref = _ref_forward(params, X, valid_lens, num_heads)
    assert jnp.allclose(out, ref, atol=1e-1, rtol=1e-1), (
        float(jnp.max(jnp.abs(out - ref))))

    print("KERNEL_OK")
</pallas_src>

<mosaic_0001>
module attributes {stable_mosaic.version = 11 : i64} {
  func.func @_matmul_kernel(%arg0: i32, %arg1: i32, %arg2: i32, %arg3: memref<16x32xf32, #tpu.memory_space<vmem>>, %arg4: memref<96x32xf32, #tpu.memory_space<vmem>>, %arg5: memref<16x96xbf16, #tpu.memory_space<vmem>>, %arg6: memref<16x96xf32, #tpu.memory_space<vmem>>) attributes {dimension_semantics = [#tpu.dimension_semantics<parallel>, #tpu.dimension_semantics<parallel>, #tpu.dimension_semantics<arbitrary>], iteration_bounds = array<i64: 1, 1, 1>, scalar_prefetch = 0 : i64, scratch_operands = 1 : i64, tpu.core_type = #tpu.core_type<tc>, window_params = [{transform_indices = @transform_0, window_bounds = array<i64: 16, 32>}, {transform_indices = @transform_1, window_bounds = array<i64: 96, 32>}, {transform_indices = @transform_2, window_bounds = array<i64: 16, 96>}]} {
    %c0_i32 = arith.constant 0 : i32
    %0 = arith.cmpi eq, %arg2, %c0_i32 : i32
    %1 = arith.extui %0 : i1 to i32
    %c0_i32_0 = arith.constant 0 : i32
    %2 = arith.cmpi ne, %1, %c0_i32_0 : i32
    scf.if %2 {
      %cst_10 = arith.constant 0.000000e+00 : f32
      %14 = vector.broadcast %cst_10 : f32 to vector<16x96xf32>
      %c0_11 = arith.constant 0 : index
      %c0_12 = arith.constant 0 : index
      %15 = vector.load %arg6[%c0_11, %c0_12] : memref<16x96xf32, #tpu.memory_space<vmem>>, vector<16x96xf32>
      tpu.vector_store %arg6[%c0_11, %c0_12], %14 {strides = array<i32>} : memref<16x96xf32, #tpu.memory_space<vmem>>, vector<16x96xf32>,
    } else {
    }
    %c0 = arith.constant 0 : index
    %c0_1 = arith.constant 0 : index
    %3 = vector.load %arg6[%c0, %c0_1] : memref<16x96xf32, #tpu.memory_space<vmem>>, vector<16x96xf32>
    %c0_2 = arith.constant 0 : index
    %c0_3 = arith.constant 0 : index
    %4 = vector.load %arg3[%c0_2, %c0_3] : memref<16x32xf32, #tpu.memory_space<vmem>>, vector<16x32xf32>
    %5 = arith.truncf %4 : vector<16x32xf32> to vector<16x32xbf16>
    %c0_4 = arith.constant 0 : index
    %c0_5 = arith.constant 0 : index
    %6 = vector.load %arg4[%c0_4, %c0_5] : memref<96x32xf32, #tpu.memory_space<vmem>>, vector<96x32xf32>
    %7 = arith.truncf %6 : vector<96x32xf32> to vector<96x32xbf16>
    %cst = arith.constant dense<0.000000e+00> : vector<16x96xf32>
    %8 = tpu.matmul %5, %7, %cst {dimension_numbers = #tpu.dot_dimension_numbers<[1], [1], [0], [0], [0, 0, 1, 0], [], []>} : vector<16x32xbf16>, vector<96x32xbf16>, vector<16x96xf32> -> vector<16x96xf32>
    %9 = arith.addf %3, %8 : vector<16x96xf32>
    %c0_6 = arith.constant 0 : index
    %c0_7 = arith.constant 0 : index
    %10 = vector.load %arg6[%c0_6, %c0_7] : memref<16x96xf32, #tpu.memory_space<vmem>>, vector<16x96xf32>
    tpu.vector_store %arg6[%c0_6, %c0_7], %9 {strides = array<i32>} : memref<16x96xf32, #tpu.memory_space<vmem>>, vector<16x96xf32>,
    %c0_i32_8 = arith.constant 0 : i32
    %11 = arith.cmpi eq, %arg2, %c0_i32_8 : i32
    %12 = arith.extui %11 : i1 to i32
    %c0_i32_9 = arith.constant 0 : i32
    %13 = arith.cmpi ne, %12, %c0_i32_9 : i32
    scf.if %13 {
      %c0_10 = arith.constant 0 : index
      %c0_11 = arith.constant 0 : index
      %14 = vector.load %arg6[%c0_10, %c0_11] : memref<16x96xf32, #tpu.memory_space<vmem>>, vector<16x96xf32>
      %15 = arith.truncf %14 : vector<16x96xf32> to vector<16x96xbf16>
      %c0_12 = arith.constant 0 : index
      %c0_13 = arith.constant 0 : index
      %16 = vector.load %arg5[%c0_12, %c0_13] : memref<16x96xbf16, #tpu.memory_space<vmem>>, vector<16x96xbf16>
      tpu.vector_store %arg5[%c0_12, %c0_13], %15 {strides = array<i32>} : memref<16x96xbf16, #tpu.memory_space<vmem>>, vector<16x96xbf16>,
    } else {
    }
    return
  }
  func.func @transform_0(%arg0: i32, %arg1: i32, %arg2: i32) -> (i32, i32) {
    %c0_i32 = arith.constant 0 : i32
    return %arg0, %arg2 : i32, i32
  }
  func.func @transform_1(%arg0: i32, %arg1: i32, %arg2: i32) -> (i32, i32) {
    %c0_i32 = arith.constant 0 : i32
    return %arg1, %arg2 : i32, i32
  }
  func.func @transform_2(%arg0: i32, %arg1: i32, %arg2: i32) -> (i32, i32) {
    %c0_i32 = arith.constant 0 : i32
    return %arg0, %arg1 : i32, i32
  }
}

</mosaic_0001>

<bundles_post_ra>
// kernel: tpu_custom_call.1
= control target key start
LH: loop header
LB: loop body
LE: loop exit
PB: predicated region body
PF: predicated region fallthrough
CT: control target
= control target key end

     0   :  { %vm43_vm0 = vcmask 261120   ;;  %s218_s0 = inlined_call_operand.vmem [shape: f32[16,32], index: 0, kind: input, shape index: {}]   ;;  %s219_s1 = inlined_call_operand.vmem [shape: f32[96,32], index: 1, kind: input, shape index: {}]   ;;  %s220_s2 = inlined_call_operand.hbm [shape: bf16[16,96], index: 2, kind: output, shape index: {}]  }
   0x1   :  { %v35_v0 = vld [vmem:[%s219_s1 + $0x50] sm:$0xff]  ;;  %v36_v1 = vld [vmem:[%s219_s1 + $0x58] sm:$0xff]  ;;  %v33_v3 = vld [vmem:[%s219_s1 + $0x40] sm:$0xff] }
   0x2   :  { %v42_v2 = vpack.c.bf16 %v36_v1, %v35_v0  ;;  %v34_v4 = vld [vmem:[%s219_s1 + $0x48] sm:$0xff] }
   0x4   :  { %v63_v5 = vsel %vm43_vm0, %v42_v2, 0 }
   0x5   :  { %7 = vsyncpa [#allocation4], 0  ;;  %67 = vmatpush.bf16.xpose.msra.mxu0 %v63_v5  ;;  %v41_v6 = vpack.c.bf16 %v34_v4, %v33_v3  ;;  %v31_v8 = vld [vmem:[%s219_s1 + $0x30] sm:$0xff]  ;;  %v32_v9 = vld [vmem:[%s219_s1 + $0x38] sm:$0xff]  ;;  %vm17_vm1 = vcmask 785408   ;;  %v143_v14 = vmov 0.0  }
   0x6   :  { %v40_v10 = vpack.c.bf16 %v32_v9, %v31_v8  ;;  %v29_v12 = vld [vmem:[%s219_s1 + $0x20] sm:$0xff]  ;;  %v30_v13 = vld [vmem:[%s219_s1 + $0x28] sm:$0xff]  ;;  %18 = vst.msk [vmem:[#allocation2] sm:$0xff] %vm17_vm1, %v143_v14  ;;  %v27_v17 = vld [vmem:[%s219_s1 + $0x10] sm:$0xff]  ;;  %vm91_vm2 = vcmask 781312   ;;  %s100_s11 = sshll.u32 %s220_s2, 4  ;;  %s101_s11 = int_to_ptr.hbm [resolvable:$true] %s100_s11 }
   0x7   :  { %v60_v7 = vsel %vm43_vm0, %v41_v6, 0  ;;  %v39_v15 = vpack.c.bf16 %v30_v13, %v29_v12  ;;  %19 = vst.msk [vmem:[#allocation2 + $0x8] sm:$0xff] %vm17_vm1, %v143_v14  ;;  %v28_v18 = vld [vmem:[%s219_s1 + $0x18] sm:$0xff]  ;;  %v25_v21 = vld [vmem:[%s219_s1] sm:$0xff]  ;;  %v26_v22 = vld [vmem:[%s219_s1 + $0x8] sm:$0xff]  ;;  %s144_s1 = smov [#allocation3]  }
   0x8   :  { %v57_v11 = vsel %vm43_vm0, %v40_v10, 0  ;;  %v38_v19 = vpack.c.bf16 %v28_v18, %v27_v17  ;;  %v37_v23 = vpack.c.bf16 %v26_v22, %v25_v21  ;;  %v22_v25 = vld [vmem:[%s218_s0] sm:$0xff]  ;;  %v23_v26 = vld [vmem:[%s218_s0 + $0x8] sm:$0xff]  ;;  %s98_s9 = sshll.u32 %s144_s1, 4  ;;  %s145_s12 = smov 64   ;;  %s99_s9 = int_to_ptr.vmem [resolvable:$true] %s98_s9 }
   0x9   :  { %v54_v16 = vsel %vm43_vm0, %v39_v15, 0  ;;  %v24_v27 = vpack.c.bf16 %v23_v26, %v22_v25  ;;  %s146_s13 = smov 4  }
   0xa   :  { %v51_v20 = vsel %vm43_vm0, %v38_v19, 0  ;;  %v48_v24 = vsel %vm43_vm0, %v37_v23, 0 }
   0xd   :  { %68 = vmatpush.bf16.xpose.msra.mxu0 %v60_v7  ;;  %v20_v28 = vld [vmem:[#allocation2] sm:$0xff] }
   0xe   :  { %v21_v31 = vld [vmem:[#allocation2 + $0x8] sm:$0xff] }
  0x15   :  { %69 = vmatpush.bf16.xpose.msra.mxu0 %v57_v11 }
  0x1d   :  { %70 = vmatpush.bf16.xpose.msra.mxu0 %v54_v16 }
  0x25   :  { %71 = vmatpush.bf16.xpose.msra.mxu0 %v51_v20 }
  0x2d   :  { %72 = vmatpush.bf16.xpose.msra.mxu0 %v48_v24 }
  0x34   :  { %112 = vmatmul.msk.bf16.vlgmr.msra.gmra.mxu0 %vm43_vm0, %v24_v27 }
  0xb1   :  { %v74_v29 = vpop.f32.mrf.mxu0 }
  0xb2   :  { %v79_v30 = vadd.f32 %v74_v29, %v20_v28 }
  0xb4   :  { %82 = vst.msk [vmem:[#allocation2] sm:$0xff] %vm17_vm1, %v79_v30 }
  0xb9   :  { %v76_v32 = vpop.f32.mrf.mxu0 }
  0xba   :  { %v80_v33 = vadd.f32 %v76_v32, %v21_v31 }
  0xbb   :  { %v87_v34 = vld [vmem:[#allocation2] sm:$0xff] }
  0xbc   :  { %83 = vst.msk [vmem:[#allocation2 + $0x8] sm:$0xff] %vm17_vm1, %v80_v33  ;;  %v89_v35 = vpack.c.bf16 %v87_v34, %v87_v34 }
  0xbe   :  { %92 = vst.msk [vmem:[#allocation3] sm:$0xf] %vm91_vm2, %v89_v35 }
  0xc3   :  { %v88_v36 = vld [vmem:[#allocation2 + $0x8] sm:$0xff] }
  0xc4   :  { %v90_v37 = vpack.c.bf16 %v88_v36, %v88_v36 }
  0xc6   :  { %93 = vst.msk [vmem:[#allocation3 + $0x4] sm:$0xf] %vm91_vm2, %v90_v37 }
  0xc7   :  { %106 = dma.vmem_to_hbm [thread:$0]  %s99_s9, 128, %s101_s11, [#allocation4], %s145_s12, %s145_s12, %s146_s13  }
  0xc8   :  { %141 = dma.done.wait [#allocation4], 128  }
  0xc9   :  { %142 = vsyncadd [#allocation4], 4294967168 }
  0xca   :  { %111 = vsyncpa [#allocation4], 1 }

</bundles_post_ra>
